<compile_context>
chip_gen: v7x
topology: tpu7x:2x2x1
jax: 0.10.0
libtpu: 0.0.40
codegen_flags: <defaults>
</compile_context>

<pallas_src>
import functools

import jax
import jax.numpy as jnp
from jax.experimental import pallas as pl
from jax.experimental.pallas import tpu as pltpu


_MULTI_TC_MIN_BYTES = 8 * 1024 * 1024   # min slab size to bother splitting for 2 TCs
_TILE_CAP_BYTES = 8 * 1024 * 1024       # per-buffer cap for the two-pass tiles


def _vmem_capacity_bytes():
    """Per-core VMEM capacity; conservative 64 MiB (v7x) fallback if unqueryable."""
    try:
        cap = int(pltpu.get_tpu_info().vmem_capacity_bytes)
        if cap > 0:
            return cap
    except Exception:
        pass
    return 64 * 1024 * 1024


def _tensorcores_per_device():
    """2 for megacore / dual-TensorCore generations (v4, v5p, v7x), else 1."""
    try:
        kind = jax.devices()[0].device_kind.lower()
    except Exception:
        return 1
    for tag in ("v4", "v5p", "v7"):
        if tag in kind:
            return 2
    return 1


def _apply_act(s, act):
    if act == "mish":
        return s * jnp.tanh(jax.nn.softplus(s))
    if act in ("swish", "silu"):
        return s * jax.nn.sigmoid(s)
    raise ValueError(f"unsupported act_fn: {act}")


def _gate_from_pooled(pooled, w1t, b1, w2, b2, act):
    """pooled (C,1) f32 -> sigmoid(expand(act(reduce(pooled)))) as (C,1) f32."""
    s = jnp.sum(w1t * pooled, axis=0, keepdims=True) + b1      # (1, Csq)
    s = _apply_act(s, act)
    g = jnp.sum(w2 * s, axis=1, keepdims=True) + b2             # (C, 1)
    return jax.nn.sigmoid(g)


# --------------------------------------------------------------------------------
# fused single-pass path: whole (C, HW) slab resident; x read once, written once
# --------------------------------------------------------------------------------
def _se_fused_kernel(x_ref, w1t_ref, b1_ref, w2_ref, b2_ref, o_ref, *, inv_hw, act):
    x = x_ref[0]                                                           # (C, HW) native dtype
    # f32 accumulation for the spatial mean; x itself is NOT upcast/materialized.
    pooled = jnp.sum(x.astype(jnp.float32), axis=1, keepdims=True) * inv_hw
    gate = _gate_from_pooled(pooled, w1t_ref[...], b1_ref[...],
                             w2_ref[...], b2_ref[...], act)                # (C, 1) f32
    o_ref[0] = (x * gate.astype(x.dtype)).astype(o_ref.dtype)


# --------------------------------------------------------------------------------
# two-pass tiled path
#   pass 1: per-(image, spatial-chunk) partial channel sums   grid (N, K, T)
#   pass 2: recombine chunks -> gate -> rescale tile by tile   grid (N, n_tiles)
# --------------------------------------------------------------------------------
def _se_psum_kernel(x_ref, psum_ref, *, hw_total, hw_tile, n_tiles,
                    tiles_per_chunk, ragged, has_phantom):
    k = pl.program_id(1)
    t = pl.program_id(2)
    j = k * tiles_per_chunk + t            # global spatial-tile index (unclamped)

    @pl.when(t == 0)
    def _():
        psum_ref[...] = jnp.zeros_like(psum_ref)

    x = x_ref[0]                           # (C, hw_tile), native dtype

    def _accumulate(vals_f32):
        psum_ref[0, 0] += jnp.sum(vals_f32, axis=1, keepdims=True)         # (C, 1) f32

    if ragged or has_phantom:
        # Only the last real (ragged) tile and phantom tiles of the last chunk
        # need the iota/compare/select pass; everything else adds unmasked.
        mask_from = n_tiles - 1 if ragged else n_tiles

        @pl.when(j < mask_from)
        def _():
            _accumulate(x.astype(jnp.float32))

        @pl.when(j >= mask_from)
        def _():
            col = jax.lax.broadcasted_iota(jnp.int32, x.shape, 1) + j * hw_tile
            _accumulate(jnp.where(col < hw_total, x.astype(jnp.float32), 0.0))
    else:
        _accumulate(x.astype(jnp.float32))


def _se_scale_kernel(x_ref, psum_ref, w1t_ref, b1_ref, w2_ref, b2_ref, o_ref,
                     *, inv_hw, act):
    # Recombine per-chunk partial sums and recompute the tiny gate per tile
    # (a few vregs of VPU/EUP work, hidden under the tile DMA).
    pooled = jnp.sum(psum_ref[0], axis=0) * inv_hw                         # (C, 1) f32
    gate = _gate_from_pooled(pooled, w1t_ref[...], b1_ref[...],
                             w2_ref[...], b2_ref[...], act)                # (C, 1) f32
    x = x_ref[0]                                                           # (C, hw_tile) native
    # Padded lanes of a ragged last tile multiply garbage; Pallas clips the
    # partial output block on writeback, so those lanes never reach HBM.
    o_ref[0] = (x * gate.astype(x.dtype)).astype(o_ref.dtype)


def squeeze_excitation(x_nchw, w_reduce, b_reduce, w_expand, b_expand, *,
                       act_fn="mish", max_tile_bytes=None,
                       force_spatial_chunks=None, donate_input=False):
    """SqueezeExcitation forward.

    x_nchw:   (N, C, H, W)              (PyTorch layout)
    w_reduce: (Csq, C, 1, 1) or (Csq, C)
    b_reduce: (Csq,)
    w_expand: (C, Csq, 1, 1) or (C, Csq)
    b_expand: (C,)
    max_tile_bytes:       optional override of the automatic VMEM budgets (tests).
    force_spatial_chunks: optional override of the pass-1 spatial-chunk count (tests).
    donate_input:         alias x to the output of the scale pass (tiled path only).
    """
    n, c, h, w = x_nchw.shape
    hw = h * w
    csq = w_reduce.shape[0]
    itemsize = jnp.dtype(x_nchw.dtype).itemsize

    # Glue: spatial on the lane axis, 1x1-conv weights as small f32 2-D tables.
    x3 = x_nchw.reshape(n, c, hw)
    w1t = jnp.transpose(w_reduce.reshape(csq, c)).astype(jnp.float32)      # (C, Csq)
    b1 = b_reduce.reshape(1, csq).astype(jnp.float32)
    b2 = b_expand.reshape(c, 1).astype(jnp.float32)
    w2 = w_expand.reshape(c, csq).astype(jnp.float32)                      # (C, Csq)

    # ---- per-generation VMEM budgets + explicit scoped-VMEM limit ----
    vmem_cap = _vmem_capacity_bytes()          # 128 MiB (v5e/v6e) / 64 MiB (v7x)
    usable = (vmem_cap * 3) // 4               # leave headroom for compiler internals
    vmem_limit = int(usable)

    if max_tile_bytes is None:
        # fused: in+out double-buffered (4 native copies) + one f32-wide temporary
        fused_max_elems = usable // (4 * itemsize + 4)
        # tiled: ~6 native copies per tile live, capped at 8 MiB per buffer
        tile_max_elems = min(usable // (6 * itemsize), _TILE_CAP_BYTES // itemsize)
    else:
        fused_max_elems = max(max_tile_bytes // itemsize, 128)
        tile_max_elems = max(max_tile_bytes // itemsize, 128)

    # ---- dispatch: fused single-pass vs two-pass tiled (and spatial chunking) ----
    num_tc = _tensorcores_per_device()
    if force_spatial_chunks is not None:
        chunks_req = max(int(force_spatial_chunks), 1)
    else:
        chunks_req = num_tc if n < num_tc else 1

    slab_bytes = c * hw * itemsize
    want_chunked = chunks_req > 1 and (force_spatial_chunks is not None
                                       or slab_bytes >= _MULTI_TC_MIN_BYTES)
    use_fused = (c * hw <= fused_max_elems) and not want_chunked

    if use_fused:
        # ---------- fused single-pass path: x read/written exactly once ----------
        y3 = pl.pallas_call(
            functools.partial(_se_fused_kernel, inv_hw=1.0 / hw, act=act_fn),
            out_shape=jax.ShapeDtypeStruct((n, c, hw), x_nchw.dtype),
            grid_spec=pltpu.PrefetchScalarGridSpec(
                num_scalar_prefetch=0,
                grid=(n,),
                in_specs=[
                    pl.BlockSpec((1, c, hw), lambda i: (i, 0, 0)),
                    pl.BlockSpec((c, csq), lambda i: (0, 0)),
                    pl.BlockSpec((1, csq), lambda i: (0, 0)),
                    pl.BlockSpec((c, csq), lambda i: (0, 0)),
                    pl.BlockSpec((c, 1), lambda i: (0, 0)),
                ],
                out_specs=pl.BlockSpec((1, c, hw), lambda i: (i, 0, 0)),
            ),
            compiler_params=pltpu.CompilerParams(
                dimension_semantics=("parallel",),
                vmem_limit_bytes=vmem_limit),
            cost_estimate=pl.CostEstimate(
                flops=2 * n * c * hw,
                transcendentals=n * (3 * c + 4 * csq),
                bytes_accessed=2 * n * c * hw * itemsize),
        )(x3, w1t, b1, w2, b2)
        return y3.reshape(n, c, h, w)

    # ---------- two-pass tiled path ----------
    hw_tile = max((tile_max_elems // max(c, 1)) // 128, 1) * 128
    n_tiles = pl.cdiv(hw, hw_tile)
    if chunks_req > 1 and n_tiles < chunks_req:
        # Shrink the tile so every TensorCore chunk gets at least one tile.
        alt_tile = max(pl.cdiv(pl.cdiv(hw, chunks_req), 128), 1) * 128
        if pl.cdiv(hw, alt_tile) >= chunks_req:
            hw_tile, n_tiles = alt_tile, pl.cdiv(hw, alt_tile)
    chunks = min(chunks_req, n_tiles)
    tiles_per_chunk = pl.cdiv(n_tiles, chunks)

    ragged = (hw % hw_tile) != 0
    has_phantom = chunks * tiles_per_chunk != n_tiles

    if has_phantom:
        # Clamp the DMA to the last real tile; the kernel masks its contribution.
        x_idx1 = lambda i, k, t: (i, 0, jnp.minimum(k * tiles_per_chunk + t,
                                                    n_tiles - 1))
    else:
        x_idx1 = lambda i, k, t: (i, 0, k * tiles_per_chunk + t)

    # Pass 1: per-(image, chunk) partial channel sums. Chunk axis is 'parallel',
    # so on dual-TensorCore chips (v7x) N=1 still uses both cores.
    psums = pl.pallas_call(
        functools.partial(_se_psum_kernel, hw_total=hw, hw_tile=hw_tile,
                          n_tiles=n_tiles, tiles_per_chunk=tiles_per_chunk,
                          ragged=ragged, has_phantom=has_phantom),
        out_shape=jax.ShapeDtypeStruct((n, chunks, c, 1), jnp.float32),
        grid_spec=pltpu.PrefetchScalarGridSpec(
            num_scalar_prefetch=0,
            grid=(n, chunks, tiles_per_chunk),
            in_specs=[pl.BlockSpec((1, c, hw_tile), x_idx1)],
            out_specs=pl.BlockSpec((1, 1, c, 1), lambda i, k, t: (i, k, 0, 0)),
        ),
        compiler_params=pltpu.CompilerParams(
            dimension_semantics=("parallel", "parallel", "arbitrary"),
            vmem_limit_bytes=vmem_limit),
        cost_estimate=pl.CostEstimate(
            flops=n * c * hw,
            transcendentals=0,
            bytes_accessed=n * c * hw * itemsize),
    )(x3)

    # Pass 2: combine chunk partial sums -> gate -> rescale, tile by tile.
    y3 = pl.pallas_call(
        functools.partial(_se_scale_kernel, inv_hw=1.0 / hw, act=act_fn),
        out_shape=jax.ShapeDtypeStruct((n, c, hw), x_nchw.dtype),
        grid_spec=pltpu.PrefetchScalarGridSpec(
            num_scalar_prefetch=0,
            grid=(n, n_tiles),
            in_specs=[
                pl.BlockSpec((1, c, hw_tile), lambda i, j: (i, 0, j)),
                pl.BlockSpec((1, chunks, c, 1), lambda i, j: (i, 0, 0, 0)),
                pl.BlockSpec((c, csq), lambda i, j: (0, 0)),
                pl.BlockSpec((1, csq), lambda i, j: (0, 0)),
                pl.BlockSpec((c, csq), lambda i, j: (0, 0)),
                pl.BlockSpec((c, 1), lambda i, j: (0, 0)),
            ],
            out_specs=pl.BlockSpec((1, c, hw_tile), lambda i, j: (i, 0, j)),
        ),
        compiler_params=pltpu.CompilerParams(
            dimension_semantics=("parallel", "parallel"),
            vmem_limit_bytes=vmem_limit),
        input_output_aliases=({0: 0} if donate_input else {}),
        cost_estimate=pl.CostEstimate(
            flops=2 * n * c * hw,
            transcendentals=n * n_tiles * (3 * c + 4 * csq),
            bytes_accessed=2 * n * c * hw * itemsize),
    )(x3, psums, w1t, b1, w2, b2)
    return y3.reshape(n, c, h, w)


def _reference(x, w_reduce, b_reduce, w_expand, b_expand):
    """Pure-JAX NCHW reference mirroring the PyTorch SqueezeExcitation forward."""
    c = x.shape[1]
    csq = w_reduce.shape[0]
    pooled = jnp.mean(x, axis=(2, 3), keepdims=True)                         # (N,C,1,1)
    s = jnp.einsum('nchw,oc->nohw', pooled, w_reduce.reshape(csq, c))
    s = s + b_reduce[None, :, None, None]
    s = s * jnp.tanh(jax.nn.softplus(s))                                     # Mish (default act)
    e = jnp.einsum('nchw,oc->nohw', s, w_expand.reshape(c, csq))
    e = e + b_expand[None, :, None, None]
    return x * jax.nn.sigmoid(e)


if __name__ == "__main__":
    # Shapes consistent with SqueezeExcitation(in_channels=4, se_ratio=0.25).
    N, C, H, W = 2, 4, 16, 16
    SE_RATIO = 0.25
    CSQ = max(int(C * SE_RATIO), 1)

    key = jax.random.PRNGKey(0)
    kx, kw1, kb1, kw2, kb2, kx2, kx3 = jax.random.split(key, 7)

    x = jax.random.normal(kx, (N, C, H, W), jnp.float32)
    w_reduce = jax.random.normal(kw1, (CSQ, C, 1, 1), jnp.float32) * 0.5
    b_reduce = 0.1 * jax.random.normal(kb1, (CSQ,), jnp.float32)
    w_expand = jax.random.normal(kw2, (C, CSQ, 1, 1), jnp.float32) * 0.5
    b_expand = 0.1 * jax.random.normal(kb2, (C,), jnp.float32)

    se = jax.jit(squeeze_excitation,
                 static_argnames=("act_fn", "max_tile_bytes",
                                  "force_spatial_chunks", "donate_input"))

    # 1) fused single-pass kernel (whole image resident in VMEM), f32.
    out = jax.block_until_ready(se(x, w_reduce, b_reduce, w_expand, b_expand))
    ref = _reference(x, w_reduce, b_reduce, w_expand, b_expand)
    assert out.shape == ref.shape
    assert jnp.allclose(out, ref, atol=1e-5, rtol=1e-5), "fused path mismatch"

    # 1b) fused path with bf16 input: native-dtype rescale, f32 pooling accumulator.
    xb = x.astype(jnp.bfloat16)
    outb = jax.block_until_ready(se(xb, w_reduce, b_reduce, w_expand, b_expand))
    refb = _reference(xb.astype(jnp.float32), w_reduce, b_reduce, w_expand, b_expand)
    assert outb.dtype == jnp.bfloat16
    assert jnp.allclose(outb.astype(jnp.float32), refb, atol=5e-2, rtol=5e-2), \
        "fused bf16 path mismatch"

    # 2) two-pass tiled path (forced tiny tile, ragged last tile) + donated output.
    x2 = jax.random.normal(kx2, (N, C, 15, 15), jnp.float32)
    out2 = jax.block_until_ready(
        se(x2, w_reduce, b_reduce, w_expand, b_expand,
           max_tile_bytes=2048, donate_input=True))
    ref2 = _reference(x2, w_reduce, b_reduce, w_expand, b_expand)
    assert jnp.allclose(out2, ref2, atol=1e-5, rtol=1e-5), "tiled path mismatch"

    # 3) tiled path with 2 spatial chunks (dual-TensorCore pass-1 layout):
    #    N=1, ragged last tile AND a phantom (clamped + fully-masked) tile.
    x3_ = jax.random.normal(kx3, (1, C, 17, 17), jnp.float32)
    out3 = jax.block_until_ready(
        se(x3_, w_reduce, b_reduce, w_expand, b_expand,
           max_tile_bytes=2048, force_spatial_chunks=2))
    ref3 = _reference(x3_, w_reduce, b_reduce, w_expand, b_expand)
    assert jnp.allclose(out3, ref3, atol=1e-5, rtol=1e-5), "chunked path mismatch"

    # TODO(synk): only the forward pass is implemented; the custom autograd
    # backward of MemoryEfficientMish/Swish has no role in inference.
    print("KERNEL_OK")
</pallas_src>

<mosaic_0001>
module attributes {stable_mosaic.version = 11 : i64} {
  func.func @_se_fused_kernel(%arg0: i32, %arg1: memref<1x4x256xf32, #tpu.memory_space<vmem>>, %arg2: memref<4x1xf32, #tpu.memory_space<vmem>>, %arg3: memref<1x1xf32, #tpu.memory_space<vmem>>, %arg4: memref<4x1xf32, #tpu.memory_space<vmem>>, %arg5: memref<4x1xf32, #tpu.memory_space<vmem>>, %arg6: memref<1x4x256xf32, #tpu.memory_space<vmem>>) attributes {dimension_semantics = [#tpu.dimension_semantics<parallel>], iteration_bounds = array<i64: 2>, scalar_prefetch = 0 : i64, scratch_operands = 0 : i64, tpu.core_type = #tpu.core_type<tc>, window_params = [{transform_indices = @transform_0, window_bounds = array<i64: 1, 4, 256>}, {pipeline_mode = #tpu.pipeline_mode<synchronous>, transform_indices = @transform_1, window_bounds = array<i64: 4, 1>}, {pipeline_mode = #tpu.pipeline_mode<synchronous>, transform_indices = @transform_2, window_bounds = array<i64: 1, 1>}, {pipeline_mode = #tpu.pipeline_mode<synchronous>, transform_indices = @transform_3, window_bounds = array<i64: 4, 1>}, {pipeline_mode = #tpu.pipeline_mode<synchronous>, transform_indices = @transform_4, window_bounds = array<i64: 4, 1>}, {transform_indices = @transform_5, window_bounds = array<i64: 1, 4, 256>}]} {
    %c0 = arith.constant 0 : index
    %c0_0 = arith.constant 0 : index
    %c0_1 = arith.constant 0 : index
    %0 = vector.load %arg1[%c0, %c0_0, %c0_1] : memref<1x4x256xf32, #tpu.memory_space<vmem>>, vector<1x4x256xf32>
    %1 = vector.shape_cast %0 : vector<1x4x256xf32> to vector<4x256xf32>
    %cst = arith.constant dense<0.000000e+00> : vector<4xf32>
    %2 = vector.multi_reduction <add>, %1, %cst [1] : vector<4x256xf32> to vector<4xf32>
    %3 = vector.shape_cast %2 : vector<4xf32> to vector<4x1xf32>
    %cst_2 = arith.constant 3.906250e-03 : f32
    %4 = vector.broadcast %cst_2 : f32 to vector<4x1xf32>
    %5 = arith.mulf %3, %4 : vector<4x1xf32>
    %c0_3 = arith.constant 0 : index
    %c0_4 = arith.constant 0 : index
    %6 = vector.load %arg2[%c0_3, %c0_4] : memref<4x1xf32, #tpu.memory_space<vmem>>, vector<4x1xf32>
    %c0_5 = arith.constant 0 : index
    %c0_6 = arith.constant 0 : index
    %7 = vector.load %arg3[%c0_5, %c0_6] : memref<1x1xf32, #tpu.memory_space<vmem>>, vector<1x1xf32>
    %c0_7 = arith.constant 0 : index
    %c0_8 = arith.constant 0 : index
    %8 = vector.load %arg4[%c0_7, %c0_8] : memref<4x1xf32, #tpu.memory_space<vmem>>, vector<4x1xf32>
    %c0_9 = arith.constant 0 : index
    %c0_10 = arith.constant 0 : index
    %9 = vector.load %arg5[%c0_9, %c0_10] : memref<4x1xf32, #tpu.memory_space<vmem>>, vector<4x1xf32>
    %10 = arith.mulf %6, %5 : vector<4x1xf32>
    %cst_11 = arith.constant dense<0.000000e+00> : vector<1xf32>
    %11 = vector.multi_reduction <add>, %10, %cst_11 [0] : vector<4x1xf32> to vector<1xf32>
    %12 = vector.shape_cast %11 : vector<1xf32> to vector<1x1xf32>
    %13 = arith.addf %12, %7 : vector<1x1xf32>
    %cst_12 = arith.constant 0.000000e+00 : f32
    %14 = vector.broadcast %cst_12 : f32 to vector<1x1xf32>
    %15 = arith.maximumf %13, %14 : vector<1x1xf32>
    %16 = vector.broadcast %cst_12 : f32 to vector<1x1xf32>
    %17 = arith.subf %13, %16 : vector<1x1xf32>
    %18 = arith.cmpf one, %17, %17 : vector<1x1xf32>
    %19 = vector.broadcast %cst_12 : f32 to vector<1x1xf32>
    %20 = arith.addf %13, %19 : vector<1x1xf32>
    %21 = math.absf %17 : vector<1x1xf32>
    %cst_13 = arith.constant 0.000000e+00 : f32
    %22 = vector.broadcast %cst_13 : f32 to vector<1x1xf32>
    %23 = arith.subf %22, %21 : vector<1x1xf32>
    %24 = math.exp %23 : vector<1x1xf32>
    %25 = math.log1p %24 : vector<1x1xf32>
    %26 = arith.addf %15, %25 : vector<1x1xf32>
    %27 = arith.select %18, %20, %26 : vector<1x1xi1>, vector<1x1xf32>
    %28 = math.tanh %27 : vector<1x1xf32>
    %29 = arith.mulf %13, %28 : vector<1x1xf32>
    %30 = vector.broadcast %29 : vector<1x1xf32> to vector<4x1xf32>
    %31 = arith.mulf %8, %30 : vector<4x1xf32>
    %cst_14 = arith.constant dense<0.000000e+00> : vector<4xf32>
    %32 = vector.multi_reduction <add>, %31, %cst_14 [1] : vector<4x1xf32> to vector<4xf32>
    %33 = vector.shape_cast %32 : vector<4xf32> to vector<4x1xf32>
    %34 = arith.addf %33, %9 : vector<4x1xf32>
    %35 = arith.negf %34 : vector<4x1xf32>
    %36 = math.exp %35 : vector<4x1xf32>
    %cst_15 = arith.constant 1.000000e+00 : f32
    %37 = vector.broadcast %cst_15 : f32 to vector<4x1xf32>
    %38 = arith.addf %37, %36 : vector<4x1xf32>
    %39 = arith.divf %37, %38 : vector<4x1xf32>
    %40 = vector.broadcast %39 : vector<4x1xf32> to vector<4x256xf32>
    %41 = arith.mulf %1, %40 : vector<4x256xf32>
    %c0_16 = arith.constant 0 : index
    %c0_17 = arith.constant 0 : index
    %c0_18 = arith.constant 0 : index
    %42 = vector.load %arg6[%c0_16, %c0_17, %c0_18] : memref<1x4x256xf32, #tpu.memory_space<vmem>>, vector<1x4x256xf32>
    %43 = vector.shape_cast %42 : vector<1x4x256xf32> to vector<4x256xf32>
    %44 = vector.shape_cast %41 : vector<4x256xf32> to vector<1x4x256xf32>
    tpu.vector_store %arg6[%c0_16, %c0_17, %c0_18], %44 {strides = array<i32>} : memref<1x4x256xf32, #tpu.memory_space<vmem>>, vector<1x4x256xf32>,
    return
  }
  func.func @transform_0(%arg0: i32) -> (i32, i32, i32) {
    %c0_i32 = arith.constant 0 : i32
    %c0_i32_0 = arith.constant 0 : i32
    %c0_i32_1 = arith.constant 0 : i32
    return %arg0, %c0_i32, %c0_i32_0 : i32, i32, i32
  }
  func.func @transform_1(%arg0: i32) -> (i32, i32) {
    %c0_i32 = arith.constant 0 : i32
    %c0_i32_0 = arith.constant 0 : i32
    %c0_i32_1 = arith.constant 0 : i32
    return %c0_i32, %c0_i32_0 : i32, i32
  }
  func.func @transform_2(%arg0: i32) -> (i32, i32) {
    %c0_i32 = arith.constant 0 : i32
    %c0_i32_0 = arith.constant 0 : i32
    %c0_i32_1 = arith.constant 0 : i32
    return %c0_i32, %c0_i32_0 : i32, i32
  }
  func.func @transform_3(%arg0: i32) -> (i32, i32) {
    %c0_i32 = arith.constant 0 : i32
    %c0_i32_0 = arith.constant 0 : i32
    %c0_i32_1 = arith.constant 0 : i32
    return %c0_i32, %c0_i32_0 : i32, i32
  }
  func.func @transform_4(%arg0: i32) -> (i32, i32) {
    %c0_i32 = arith.constant 0 : i32
    %c0_i32_0 = arith.constant 0 : i32
    %c0_i32_1 = arith.constant 0 : i32
    return %c0_i32, %c0_i32_0 : i32, i32
  }
  func.func @transform_5(%arg0: i32) -> (i32, i32, i32) {
    %c0_i32 = arith.constant 0 : i32
    %c0_i32_0 = arith.constant 0 : i32
    %c0_i32_1 = arith.constant 0 : i32
    return %arg0, %c0_i32, %c0_i32_0 : i32, i32, i32
  }
}

</mosaic_0001>

<bundles_post_ra>
// kernel: squeeze_excitation.1
= control target key start
LH: loop header
LB: loop body
LE: loop exit
PB: predicated region body
PF: predicated region fallthrough
CT: control target
= control target key end

     0   :  { %s433_s20 = smov 0   ;;  %s472_s0 = inlined_call_operand.vmem [shape: f32[2,4,256], index: 0, kind: input, shape index: {}]   ;;  %s473_s1 = inlined_call_operand.vmem [shape: f32[4,1], index: 1, kind: input, shape index: {}]   ;;  %s474_s2 = inlined_call_operand.<no memory space> [shape: f32[1,1], index: 2, kind: input, shape index: {}]   ;;  %s475_s3 = inlined_call_operand.vmem [shape: f32[4,1], index: 3, kind: input, shape index: {}]   ;;  %s476_s4 = inlined_call_operand.vmem [shape: f32[4,1], index: 4, kind: input, shape index: {}]   ;;  %s477_s5 = inlined_call_operand.vmem [shape: f32[2,4,256], index: 5, kind: output, shape index: {}]  }
   0x1   :  { %v10_v0 = vstv %s474_s2 }
   0x2   :  { %11 = vst [vmem:[#allocation2] sm:$0x1] %v10_v0 }
   0x3 LB: > { %s354_s21 = sadd.s32 4294967295, %s396_s20   ;;  %p358_p0 = scmp.ge.s32.totalorder %s396_s20, 1  ;;  %s396_s20 = sphi %s433_s20, %s17_s20  }
   0x4   : > { %p189_p1 = scmp.lt.s32.totalorder %s396_s20, 3 }
   0x6   : > { %p190_p2 = pnand %p358_p0, %p189_p1 }
   0x7   : > { %p217_p3 = scmp.lt.s32.totalorder (!%p190_p2), %s354_s21, 1  ;;  %vm231_vm0 = vcmask (!%p190_p2), 1043456   ;;  %v398_v6 = vmov (!%p190_p2), 0   ;;  %v238_v7 = vld [vmem:[%s473_s1] sm:$0xf] (!%p190_p2)  ;;  %vm243_vm1 = vcmask (!%p190_p2), 3072   ;;  %v272_v35 = vlaneseq (!%p190_p2) }
   0x8   : > { %193 = sbr.rel (%p190_p2) target bundleno = 399 (0x18f), region = 40  ;;  %378 = vset.pattern.permute.xlu0 (!%p190_p2), %v398_v6  ;;  %v240_v40 = vld [vmem:[%s475_s3] sm:$0xf] (!%p190_p2)  ;;  %v399_v49 = vmov (!%p190_p2), 839922192  }
   0x9   : > { %v239_v17 = vld [vmem:[#allocation2] sm:$0x1] (!%p190_p2)  ;;  %v273_v36 = vshrl.u32 (!%p190_p2), %v272_v35, 7  ;;  %v290_v50 = vunpack.c.l.s4 (!%p190_p2), %v399_v49 }
   0xa   : > { %v241_v42 = vld [vmem:[%s476_s4] sm:$0xf] (!%p190_p2) }
   0xb   : > { %v274_v37 = vsub.s32 (!%p190_p2), 0, %v273_v36  ;;  %v291_v51 = vunpack.c.0.s8 (!%p190_p2), %v290_v50 }
   0xd   : > { %v294_v52 = vsub.s32 (!%p190_p2), %v291_v51, %v273_v36 }
   0xf   : > { %s479_s21 = smov (!%p217_p3, %s354_s21), 1 }
  0x10   : > { %s366_s2 = sshll.u32 %s479_s21, 3 }
  0x11   : > { %s221_s24 = scalar_lea.vmem %s472_s0, %s366_s2  ;;  %s226_s8 = scalar_lea.vmem %s477_s5, %s366_s2 }
  0x12   : > { %v449_v1 = vld [vmem:[%s221_s24] sm:$0xff] }
  0x13   : > { %v229_v2 = vcombine.high %v449_v1, %v449_v1  ;;  %v232_v3 = vsel %vm231_vm0, %v449_v1, 0.0 }
  0x15   : > { %v233_v4 = vsel %vm231_vm0, %v229_v2, 0.0 }
  0x16   : > { %v234_v5 = vadd.f32 %v233_v4, %v232_v3 }
  0x18   : > { %235 = vadd.xlane.f32.xlu0 %v234_v5 }
  0xa5   : > { %v236_v8 = vpop.xlane.xlu0 %235 }
  0xa6   : > { %v237_v9 = vmul.f32 0.00390625, %v236_v8 }
  0xa8   : > { %v242_v10 = vmul.f32 %v238_v7, %v237_v9 }
  0xaa   : > { %v244_v11 = vsel %vm243_vm1, %v242_v10, 0.0 }
  0xab   : > { %v245_v12 = vrot.slane %v244_v11, 4 }
  0xad   : > { %v246_v13 = vadd.f32 %v245_v12, %v244_v11 }
  0xaf   : > { %v247_v14 = vrot.slane %v246_v13, 2 }
  0xb1   : > { %v248_v15 = vadd.f32 %v247_v14, %v246_v13 }
  0xb3   : > { %v249_v16 = vrot.slane %v248_v15, 1 }
  0xb5   : > { %v250_v18 = vadd.f32 %v249_v16, %v248_v15 }
  0xb7   : > { %v251_v19 = vadd.f32 %v250_v18, %v239_v17 }
  0xb9   : > { %v255_v20 = vand.u32 2147483647, %v251_v19  ;;  %v252_v31 = vmax.f32 %v251_v19, 0.0  ;;  %vm253_vm3 = vcmp.ne.f32.partialorder %v251_v19, %v251_v19 }
  0xbb   : > { %v256_v21 = vsub.f32 0.0, %v255_v20 }
  0xbd   : > { %v257_v22 = vmul.f32 1.442695, %v256_v21 }
  0xbf   : > { %380 = vpow2.f32 %v257_v22 }
  0xc9   : > { %v381_v23 = vpop.eup %380 }
  0xca   : > { %v259_v24 = vadd.f32 1.0, %v381_v23  ;;  %v262_v25 = vmul.f32 -0.5, %v381_v23  ;;  %v265_v27 = vand.u32 2147483647, %v381_v23 }
  0xcc   : > { %382 = vlog2.f32 %v259_v24  ;;  %v263_v26 = vadd.f32 1.0, %v262_v25  ;;  %vm266_vm2 = vcmp.lt.f32.partialorder %v265_v27, 0.0004427343 }
  0xce   : > { %v264_v30 = vmul.f32 %v381_v23, %v263_v26 }
  0xd6   : > { %v383_v28 = vpop.eup %382 }
  0xd7   : > { %v261_v29 = vmul.f32 0.6931472, %v383_v28 }
  0xd9   : > { %v267_v32 = vsel %vm266_vm2, %v264_v30, %v261_v29 }
  0xda   : > { %v268_v33 = vadd.f32 %v267_v32, %v252_v31 }
  0xdc   : > { %v269_v34 = vsel %vm253_vm3, %v251_v19, %v268_v33 }
  0xdd   : > { %384 = vtanh.f32 %v269_v34 }
  0xe7   : > { %v385_v38 = vpop.eup %384 }
  0xe8   : > { %v271_v39 = vmul.f32 %v385_v38, %v251_v19 }
  0xea   : > { %v275_v41 = vrot.slane %v271_v39, %v274_v37 }
  0xec   : > { %v276_v43 = vmul.f32 %v275_v41, %v240_v40 }
  0xee   : > { %v278_v44 = vadd.f32 %v276_v43, %v241_v42 }
  0xf0   : > { %v363_v45 = vmul.f32 -1.442695, %v278_v44 }
  0xf2   : > { %386 = vpow2.f32 %v363_v45 }
  0xfc   : > { %v387_v46 = vpop.eup %386 }
  0xfd   : > { %v282_v47 = vadd.f32 1.0, %v387_v46 }
  0xff   : > { %388 = vrcp.f32 %v282_v47 }
 0x109   : > { %v389_v48 = vpop.eup %388 }
 0x10a   : > { %287 = vperm.xlu0 %378, %v389_v48  }
 0x189   : > { %v288_v53 = vpop.permute.xlu0 %287 }
 0x18a   : > { %v295_v54 = vrot.slane %v288_v53, %v294_v52 }
 0x18c   : > { %v297_v55 = vmul.f32 %v295_v54, %v449_v1 }
 0x18e   : > { %298 = vst [vmem:[%s226_s8] sm:$0xff] %v297_v55 }
 0x18f PF: > { %s17_s20 = sadd.s32 1, %s396_s20  }
 0x190   : > { %p14_p4 = scmp.ge.s32.totalorder %s17_s20, 4  }
 0x192   :  { %16 = sbr.rel (!%p14_p4) target bundleno = 3 (0x3), region = 70 }

</bundles_post_ra>
